<compile_context>
chip_gen: v5e
topology: v5e:2x2
jax: 0.10.0
libtpu: 0.0.40
codegen_flags: <defaults>
</compile_context>

<pallas_src>
import functools

import jax
import jax.numpy as jnp
from jax.experimental import pallas as pl
from jax.experimental.pallas import tpu as pltpu

_LANE = 128
_SUBLANE = 8


def _round_up(x: int, m: int) -> int:
    return ((x + m - 1) // m) * m


def _cdiv(a: int, b: int) -> int:
    return (a + b - 1) // b


def _dpo_kernel(x_ref, out_ref, *, beta: float, batch: int, block_rows: int,
                inv_batch: float, needs_mask: bool):
    i = pl.program_id(0)

    @pl.when(i == 0)
    def _init():
        out_ref[...] = jnp.zeros_like(out_ref)

    # x_ref block: (4, block_rows, 128) in the input's native dtype.
    chosen = x_ref[0].astype(jnp.float32)
    rejected = x_ref[1].astype(jnp.float32)
    ref_chosen = x_ref[2].astype(jnp.float32)
    ref_rejected = x_ref[3].astype(jnp.float32)

    z = beta * ((chosen - ref_chosen) - (rejected - ref_rejected))
    # losses = -logsigmoid(z), numerically stable softplus(-z):
    losses = jnp.maximum(-z, 0.0) + jnp.log1p(jnp.exp(-jnp.abs(z)))

    if needs_mask:
        row = jax.lax.broadcasted_iota(jnp.int32, (block_rows, _LANE), 0)
        col = jax.lax.broadcasted_iota(jnp.int32, (block_rows, _LANE), 1)
        lin = (i * block_rows + row) * _LANE + col
        losses = jnp.where(lin < batch, losses, 0.0)

    # Running sum into the resident (1,1) output tile.
    out_ref[...] += jnp.sum(losses, axis=(0, 1), keepdims=True)

    @pl.when(i == pl.num_programs(0) - 1)
    def _finalize():
        out_ref[...] = out_ref[...] * inv_batch


def dpo_loss(chosen_logp, rejected_logp, reference_chosen_logp,
             reference_rejected_logp, *, beta: float = 0.1,
             beta_kl: float = 0.0, max_block_rows: int = 256):
    """Pallas implementation of DPO.forward. Returns a scalar f32 loss."""
    # beta_kl is stored by the PyTorch module but never used in forward().
    del beta_kl
    batch = chosen_logp.shape[0]

    rows = max(_cdiv(batch, _LANE), 1)
    block_rows = min(max_block_rows, _round_up(rows, _SUBLANE))
    block_rows = _round_up(block_rows, _SUBLANE)
    rows_padded = _round_up(rows, block_rows)
    total = rows_padded * _LANE
    grid = rows_padded // block_rows

    # One fused input stream, native dtype (no wrapper-side upcast).
    stacked = jnp.stack([chosen_logp, rejected_logp,
                         reference_chosen_logp, reference_rejected_logp],
                        axis=0)                                  # (4, batch)
    if total != batch:
        stacked = jnp.pad(stacked, ((0, 0), (0, total - batch)))
    stacked = stacked.reshape(4, rows_padded, _LANE)

    kernel = functools.partial(
        _dpo_kernel,
        beta=float(beta),
        batch=batch,
        block_rows=block_rows,
        inv_batch=1.0 / float(batch),
        needs_mask=(total != batch),
    )

    out = pl.pallas_call(
        kernel,
        out_shape=jax.ShapeDtypeStruct((1, 1), jnp.float32),
        grid=(grid,),
        in_specs=[pl.BlockSpec((4, block_rows, _LANE), lambda i: (0, i, 0))],
        out_specs=pl.BlockSpec((1, 1), lambda i: (0, 0)),
        compiler_params=pltpu.CompilerParams(
            dimension_semantics=("arbitrary",)),
    )(stacked)
    return out[0, 0]


def _dpo_ref(chosen, rejected, ref_chosen, ref_rejected, beta=0.1):
    x = beta * ((chosen - ref_chosen) - (rejected - ref_rejected))
    losses = jnp.maximum(-x, 0.0) + jnp.log1p(jnp.exp(-jnp.abs(x)))
    return jnp.mean(losses)


if __name__ == "__main__":
    key = jax.random.PRNGKey(0)
    ks = jax.random.split(key, 8)

    # --- Small batch (matches the module's expected usage) -----------------
    batch = 8
    chosen_logp = -jax.random.uniform(ks[0], (batch,), jnp.float32, 1.0, 20.0)
    rejected_logp = -jax.random.uniform(ks[1], (batch,), jnp.float32, 1.0, 20.0)
    reference_chosen_logp = -jax.random.uniform(ks[2], (batch,), jnp.float32, 1.0, 20.0)
    reference_rejected_logp = -jax.random.uniform(ks[3], (batch,), jnp.float32, 1.0, 20.0)

    loss = dpo_loss(chosen_logp, rejected_logp,
                    reference_chosen_logp, reference_rejected_logp, beta=0.1)
    loss = jax.block_until_ready(loss)
    ref = _dpo_ref(chosen_logp, rejected_logp,
                   reference_chosen_logp, reference_rejected_logp, beta=0.1)
    assert jnp.allclose(loss, ref, rtol=1e-5, atol=1e-6), (loss, ref)

    # --- Larger ragged batch: exercises the grid (>1 step) + tail masking --
    batch2 = 2104
    c2 = -jax.random.uniform(ks[4], (batch2,), jnp.float32, 1.0, 20.0)
    r2 = -jax.random.uniform(ks[5], (batch2,), jnp.float32, 1.0, 20.0)
    rc2 = -jax.random.uniform(ks[6], (batch2,), jnp.float32, 1.0, 20.0)
    rr2 = -jax.random.uniform(ks[7], (batch2,), jnp.float32, 1.0, 20.0)

    loss2 = dpo_loss(c2, r2, rc2, rr2, beta=0.1, max_block_rows=8)
    loss2 = jax.block_until_ready(loss2)
    ref2 = _dpo_ref(c2, r2, rc2, rr2, beta=0.1)
    assert jnp.allclose(loss2, ref2, rtol=1e-4, atol=1e-5), (loss2, ref2)

    print("KERNEL_OK")
</pallas_src>

<mosaic_0001>
module attributes {stable_mosaic.version = 11 : i64} {
  func.func @_dpo_kernel(%arg0: i32, %arg1: memref<4x8x128xf32, #tpu.memory_space<vmem>>, %arg2: memref<1x1xf32, #tpu.memory_space<vmem>>) attributes {dimension_semantics = [#tpu.dimension_semantics<arbitrary>], iteration_bounds = array<i64: 1>, scalar_prefetch = 0 : i64, scratch_operands = 0 : i64, tpu.core_type = #tpu.core_type<tc>, window_params = [{transform_indices = @transform_0, window_bounds = array<i64: 4, 8, 128>}, {pipeline_mode = #tpu.pipeline_mode<synchronous>, transform_indices = @transform_1, window_bounds = array<i64: 1, 1>}]} {
    %c0_i32 = arith.constant 0 : i32
    %0 = arith.cmpi eq, %arg0, %c0_i32 : i32
    %1 = arith.extui %0 : i1 to i32
    %c0_i32_0 = arith.constant 0 : i32
    %2 = arith.cmpi ne, %1, %c0_i32_0 : i32
    scf.if %2 {
      %cst_21 = arith.constant 0.000000e+00 : f32
      %49 = vector.broadcast %cst_21 : f32 to vector<1x1xf32>
      %c0_22 = arith.constant 0 : index
      %c0_23 = arith.constant 0 : index
      %50 = vector.load %arg2[%c0_22, %c0_23] : memref<1x1xf32, #tpu.memory_space<vmem>>, vector<1x1xf32>
      tpu.vector_store %arg2[%c0_22, %c0_23], %49 {strides = array<i32>} : memref<1x1xf32, #tpu.memory_space<vmem>>, vector<1x1xf32>,
    } else {
    }
    %c0 = arith.constant 0 : index
    %c0_1 = arith.constant 0 : index
    %c0_2 = arith.constant 0 : index
    %3 = vector.load %arg1[%c0, %c0_1, %c0_2] : memref<4x8x128xf32, #tpu.memory_space<vmem>>, vector<1x8x128xf32>
    %4 = vector.shape_cast %3 : vector<1x8x128xf32> to vector<8x128xf32>
    %c1 = arith.constant 1 : index
    %c0_3 = arith.constant 0 : index
    %c0_4 = arith.constant 0 : index
    %5 = vector.load %arg1[%c1, %c0_3, %c0_4] : memref<4x8x128xf32, #tpu.memory_space<vmem>>, vector<1x8x128xf32>
    %6 = vector.shape_cast %5 : vector<1x8x128xf32> to vector<8x128xf32>
    %c2 = arith.constant 2 : index
    %c0_5 = arith.constant 0 : index
    %c0_6 = arith.constant 0 : index
    %7 = vector.load %arg1[%c2, %c0_5, %c0_6] : memref<4x8x128xf32, #tpu.memory_space<vmem>>, vector<1x8x128xf32>
    %8 = vector.shape_cast %7 : vector<1x8x128xf32> to vector<8x128xf32>
    %c3 = arith.constant 3 : index
    %c0_7 = arith.constant 0 : index
    %c0_8 = arith.constant 0 : index
    %9 = vector.load %arg1[%c3, %c0_7, %c0_8] : memref<4x8x128xf32, #tpu.memory_space<vmem>>, vector<1x8x128xf32>
    %10 = vector.shape_cast %9 : vector<1x8x128xf32> to vector<8x128xf32>
    %11 = arith.subf %4, %8 : vector<8x128xf32>
    %12 = arith.subf %6, %10 : vector<8x128xf32>
    %13 = arith.subf %11, %12 : vector<8x128xf32>
    %cst = arith.constant 1.000000e-01 : f32
    %14 = vector.broadcast %cst : f32 to vector<8x128xf32>
    %15 = arith.mulf %14, %13 : vector<8x128xf32>
    %cst_9 = arith.constant 0.000000e+00 : f32
    %16 = vector.broadcast %cst_9 : f32 to vector<8x128xf32>
    %17 = arith.subf %16, %15 : vector<8x128xf32>
    %cst_10 = arith.constant 0.000000e+00 : f32
    %18 = vector.broadcast %cst_10 : f32 to vector<8x128xf32>
    %19 = arith.maximumf %17, %18 : vector<8x128xf32>
    %20 = math.absf %15 : vector<8x128xf32>
    %cst_11 = arith.constant 0.000000e+00 : f32
    %21 = vector.broadcast %cst_11 : f32 to vector<8x128xf32>
    %22 = arith.subf %21, %20 : vector<8x128xf32>
    %23 = math.exp %22 : vector<8x128xf32>
    %24 = math.log1p %23 : vector<8x128xf32>
    %25 = arith.addf %19, %24 : vector<8x128xf32>
    %26 = tpu.iota {dimensions = array<i32: 0>} : vector<8x128xi32>
    %27 = tpu.iota {dimensions = array<i32: 1>} : vector<8x128xi32>
    %c8_i32 = arith.constant 8 : i32
    %28 = arith.muli %arg0, %c8_i32 : i32
    %29 = vector.broadcast %28 : i32 to vector<8x128xi32>
    %30 = arith.addi %29, %26 : vector<8x128xi32>
    %c128_i32 = arith.constant 128 : i32
    %31 = vector.broadcast %c128_i32 : i32 to vector<8x128xi32>
    %32 = arith.muli %30, %31 : vector<8x128xi32>
    %33 = arith.addi %32, %27 : vector<8x128xi32>
    %c8_i32_12 = arith.constant 8 : i32
    %34 = vector.broadcast %c8_i32_12 : i32 to vector<8x128xi32>
    %35 = arith.cmpi slt, %33, %34 : vector<8x128xi32>
    %cst_13 = arith.constant 0.000000e+00 : f32
    %36 = vector.broadcast %cst_13 : f32 to vector<8x128xf32>
    %37 = arith.select %35, %25, %36 : vector<8x128xi1>, vector<8x128xf32>
    %c0_14 = arith.constant 0 : index
    %c0_15 = arith.constant 0 : index
    %38 = vector.load %arg2[%c0_14, %c0_15] : memref<1x1xf32, #tpu.memory_space<vmem>>, vector<1x1xf32>
    %39 = vector.shape_cast %37 : vector<8x128xf32> to vector<1x8x128xf32>
    %cst_16 = arith.constant dense<0.000000e+00> : vector<1xf32>
    %40 = vector.multi_reduction <add>, %39, %cst_16 [1, 2] : vector<1x8x128xf32> to vector<1xf32>
    %41 = vector.shape_cast %40 : vector<1xf32> to vector<1x1x1xf32>
    %42 = vector.extract %41[0, 0, 0] : f32 from vector<1x1x1xf32>
    %43 = vector.broadcast %42 : f32 to vector<1x1xf32>
    %44 = arith.addf %38, %43 : vector<1x1xf32>
    %c0_17 = arith.constant 0 : index
    %c0_18 = arith.constant 0 : index
    %45 = vector.load %arg2[%c0_17, %c0_18] : memref<1x1xf32, #tpu.memory_space<vmem>>, vector<1x1xf32>
    tpu.vector_store %arg2[%c0_17, %c0_18], %44 {strides = array<i32>} : memref<1x1xf32, #tpu.memory_space<vmem>>, vector<1x1xf32>,
    %c0_i32_19 = arith.constant 0 : i32
    %46 = arith.cmpi eq, %arg0, %c0_i32_19 : i32
    %47 = arith.extui %46 : i1 to i32
    %c0_i32_20 = arith.constant 0 : i32
    %48 = arith.cmpi ne, %47, %c0_i32_20 : i32
    scf.if %48 {
      %c0_21 = arith.constant 0 : index
      %c0_22 = arith.constant 0 : index
      %49 = vector.load %arg2[%c0_21, %c0_22] : memref<1x1xf32, #tpu.memory_space<vmem>>, vector<1x1xf32>
      %cst_23 = arith.constant 1.250000e-01 : f32
      %50 = vector.broadcast %cst_23 : f32 to vector<1x1xf32>
      %51 = arith.mulf %49, %50 : vector<1x1xf32>
      %c0_24 = arith.constant 0 : index
      %c0_25 = arith.constant 0 : index
      %52 = vector.load %arg2[%c0_24, %c0_25] : memref<1x1xf32, #tpu.memory_space<vmem>>, vector<1x1xf32>
      tpu.vector_store %arg2[%c0_24, %c0_25], %51 {strides = array<i32>} : memref<1x1xf32, #tpu.memory_space<vmem>>, vector<1x1xf32>,
    } else {
    }
    return
  }
  func.func @transform_0(%arg0: i32) -> (i32, i32, i32) {
    %c0_i32 = arith.constant 0 : i32
    %c0_i32_0 = arith.constant 0 : i32
    %c0_i32_1 = arith.constant 0 : i32
    return %c0_i32, %arg0, %c0_i32_0 : i32, i32, i32
  }
  func.func @transform_1(%arg0: i32) -> (i32, i32) {
    %c0_i32 = arith.constant 0 : i32
    %c0_i32_0 = arith.constant 0 : i32
    %c0_i32_1 = arith.constant 0 : i32
    return %c0_i32, %c0_i32_0 : i32, i32
  }
}

</mosaic_0001>

<bundles_post_ra>
// kernel: tpu_custom_call.1
= control target key start
LH: loop header
LB: loop body
LE: loop exit
PB: predicated region body
PF: predicated region fallthrough
CT: control target
= control target key end

     0   :  { %6 = vsyncpa [#allocation3], 0  ;;  %s193_s0 = inlined_call_operand.hbm [shape: f32[4,8,128], index: 0, kind: input, shape index: {}]   ;;  %s194_s1 = inlined_call_operand.hbm [shape: f32[1,1], index: 1, kind: output, shape index: {}]  }
   0x1   :  { %7 = vsyncpa [#allocation4], 0  ;;  %s12_s8 = sshll.u32 %s193_s0, 4  ;;  %s169_s9 = smov [#allocation2]   ;;  %s13_s8 = int_to_ptr.hbm [resolvable:$true] %s12_s8 }
   0x2   :  { %s14_s10 = sshll.u32 %s169_s9, 4  ;;  %s170_s11 = smov 128   ;;  %s15_s10 = int_to_ptr.vmem [resolvable:$true] %s14_s10 }
   0x3   :  { %s171_s12 = smov 8  }
   0x4   :  { %20 = dma.hbm_to_vmem [thread:$0]  %s13_s8, 512, %s15_s10, [#allocation3], %s170_s11, %s170_s11, %s171_s12  }
   0x5   :  { %165 = dma.done.wait [#allocation3], 512  }
   0x6   :  { %166 = vsyncadd [#allocation3], 4294966784  ;;  %v31_v0 = vld [vmem:[#allocation2] sm:$0xff]  ;;  %v33_v1 = vld [vmem:[#allocation2 + $0x8] sm:$0xff]  ;;  %v58_v11 = vlaneseq  ;;  %vm29_vm2 = vcmask 0   ;;  %v172_v29 = vmov 0.0  }
   0x7   :  { %v35_v2 = vld [vmem:[#allocation2 + $0x10] sm:$0xff]  ;;  %v37_v3 = vld [vmem:[#allocation2 + $0x18] sm:$0xff]  ;;  %30 = vst.msk [vmem:[#allocation5] sm:$0x1] %vm29_vm2, %v172_v29  ;;  %s173_s13 = smov [#allocation5]   ;;  %s96_s17 = sshll.u32 %s194_s1, 4  ;;  %s97_s17 = int_to_ptr.hbm [resolvable:$true] %s96_s17 }
   0x8   :  { %v38_v4 = vsub.f32 %v31_v0, %v35_v2  ;;  %v39_v5 = vsub.f32 %v33_v1, %v37_v3  ;;  %v59_v13 = vshrl.u32 %v58_v11, 7  ;;  %v61_v17 = vand.u32 127, %v58_v11  ;;  %s94_s14 = sshll.u32 %s173_s13, 4  ;;  %s95_s14 = int_to_ptr.vmem [resolvable:$true] %s94_s14 }
   0xa   :  { %v40_v6 = vsub.f32 %v38_v4, %v39_v5  ;;  %v65_v18 = vmul.u32 128, %v59_v13 }
   0xc   :  { %v41_v7 = vmul.f32 0.1, %v40_v6  ;;  %v66_v22 = vadd.s32 %v65_v18, %v61_v17 }
   0xe   :  { %v44_v8 = vand.u32 2147483647, %v41_v7  ;;  %v42_v19 = vsub.f32 0.0, %v41_v7  ;;  %vm67_vm1 = vcmp.lt.s32.totalorder %v66_v22, 8  ;;  %v69_v37 = vld [vmem:[#allocation5] sm:$0x1] }
  0x10   :  { %v45_v9 = vsub.f32 0.0, %v44_v8  ;;  %v43_v24 = vmax.f32 %v42_v19, 0.0 }
  0x12   :  { %v46_v10 = vmul.f32 1.442695, %v45_v9 }
  0x14   :  { %113 = vpow2.f32 %v46_v10 }
  0x1a   :  { %v114_v12 = vpop.eup %113 }
  0x1b   :  { %v48_v14 = vadd.f32 1.0, %v114_v12  ;;  %v51_v15 = vmul.f32 -0.5, %v114_v12  ;;  %v54_v20 = vand.u32 2147483647, %v114_v12 }
  0x1d   :  { %115 = vlog2.f32 %v48_v14  ;;  %v52_v16 = vadd.f32 1.0, %v51_v15  ;;  %vm55_vm0 = vcmp.lt.f32.partialorder %v54_v20, 0.0004427343 }
  0x1f   :  { %v53_v21 = vmul.f32 %v114_v12, %v52_v16 }
  0x23   :  { %v116_v23 = vpop.eup %115 }
  0x24   :  { %v50_v25 = vmul.f32 0.6931472, %v116_v23 }
  0x26   :  { %v56_v26 = vsel %vm55_vm0, %v53_v21, %v50_v25 }
  0x27   :  { %v57_v27 = vadd.f32 %v56_v26, %v43_v24 }
  0x29   :  { %v68_v28 = vsel %vm67_vm1, %v57_v27, 0.0 }
  0x2a   :  { %70 = vadd.xlane.f32.xlu0 %v68_v28 }
  0x9d   :  { %v71_v30 = vpop.xlane.xlu0 %70 }
  0x9e   :  { %v72_v31 = vrot.slane %v71_v30, 4 }
  0xa0   :  { %v73_v32 = vadd.f32 %v72_v31, %v71_v30 }
  0xa2   :  { %v74_v33 = vrot.slane %v73_v32, 2 }
  0xa4   :  { %v75_v34 = vadd.f32 %v74_v33, %v73_v32 }
  0xa6   :  { %v76_v35 = vrot.slane %v75_v34, 1 }
  0xa8   :  { %v77_v36 = vadd.f32 %v76_v35, %v75_v34 }
  0xaa   :  { %106 = vpush %v77_v36 }
  0xdb   :  { %s107_s0 = spop %106 }
  0xdc   :  { %v79_v38 = vstv %s107_s0 }
  0xdd   :  { %v80_v39 = vadd.f32 %v79_v38, %v69_v37 }
  0xdf   :  { %82 = vst.msk [vmem:[#allocation5] sm:$0x1] %vm29_vm2, %v80_v39 }
  0xe6   :  { %v86_v40 = vld [vmem:[#allocation5] sm:$0x1] }
  0xe7   :  { %v87_v41 = vmul.f32 0.125, %v86_v40 }
  0xe9   :  { %88 = vst.msk [vmem:[#allocation5] sm:$0x1] %vm29_vm2, %v87_v41 }
  0xea   :  { %99 = dma.vmem_to_hbm [thread:$0]  %s95_s14, 16, %s97_s17, [#allocation4]  }
  0xeb   :  { %167 = dma.done.wait [#allocation4], 16  }
  0xec   :  { %168 = vsyncadd [#allocation4], 4294967280 }
  0xed   :  { %104 = vsyncpa [#allocation3], 1 }
  0xee   :  { %105 = vsyncpa [#allocation4], 1 }

</bundles_post_ra>
